<compile_context>
chip_gen: v5e
topology: v5e:2x2
jax: 0.10.0
libtpu: 0.0.40
codegen_flags: <defaults>
</compile_context>

<pallas_src>
import functools
import math

import jax
import jax.numpy as jnp
from jax.experimental import pallas as pl
from jax.experimental.pallas import tpu as pltpu


def _drop_path_kernel(x_ref, s_ref, o_ref):
    # s_ref: (tile_rows, 1) f32 per-row scale (0.0 or 1/keep_prob).
    # x_ref/o_ref: (tile_rows, lanes).  Multiply in f32, cast back to x dtype.
    o_ref[...] = (x_ref[...] * s_ref[...]).astype(o_ref.dtype)


@functools.lru_cache(maxsize=None)
def _tpu_block_config():
    """(target_block_bytes, vmem_limit_bytes or None), per TPU generation."""
    try:
        kind = jax.devices()[0].device_kind.lower()
    except Exception:  # pragma: no cover - no device visible at trace time
        kind = ""
    if "v7" in kind:
        # Bigger tiles on v7x: at 3.2 TB/s the per-step overhead is ~20% of a
        # 2 MiB step.  2x(in+out) at 8 MiB = 32 MiB -> raise scoped VMEM.
        return 8 * 1024 * 1024, 40 * 1024 * 1024
    if "v6" in kind:
        return 4 * 1024 * 1024, None  # 2x(in+out)x4 MiB = 16 MiB < 32 MiB default
    # v5e (16 MiB scoped default) and unknown chips: stay conservative.
    return 2 * 1024 * 1024, None


def _compiler_params():
    _, vmem_limit = _tpu_block_config()
    kwargs = dict(dimension_semantics=("parallel",))
    if vmem_limit is not None:
        kwargs["vmem_limit_bytes"] = vmem_limit
    # TODO(synk): if profiling on v7x shows a single TensorCore running the whole
    # row loop, switch this axis to pltpu.CORE_PARALLEL.
    return pltpu.CompilerParams(**kwargs)


def _choose_lane_width(F: int, B: int):
    """Largest lane width (multiple of 128) dividing F; prefer >= 8 rows total."""
    for L in (1024, 512, 256, 128):
        if F % L == 0 and (B * F) // L >= 8:
            return L
    for L in (1024, 512, 256, 128):
        if F % L == 0:
            return L
    return None


@functools.partial(jax.jit, static_argnames=("keep_prob", "donate"))
def _drop_path_impl(x, key, *, keep_prob: float, donate: bool = False):
    B = x.shape[0]
    F = math.prod(x.shape[1:])

    # Per-sample mask & 1/keep_prob folded into a single f32 scale (computed in
    # f32 regardless of x dtype so the keep/drop decision matches the f32 ref).
    u = jax.random.uniform(key, (B,), dtype=jnp.float32)
    scale = jnp.floor(keep_prob + u) * jnp.float32(1.0 / keep_prob)  # (B,)

    itemsize = jnp.dtype(x.dtype).itemsize
    sublane = 16 if itemsize == 2 else 8
    block_bytes, _ = _tpu_block_config()
    cparams = _compiler_params()

    L = _choose_lane_width(F, B)
    if L is not None:
        # Lane-dense tall slab: every sample owns whole rows.
        rows_per_sample = F // L
        rows = B * rows_per_sample
        x2d = x.reshape(rows, L)
        s2d = jnp.repeat(scale, rows_per_sample)[:, None]  # (rows, 1) f32

        tile_r = (block_bytes // (L * itemsize)) // sublane * sublane
        tile_r = max(sublane, tile_r)
        if tile_r >= rows:
            tile_r = rows  # full extent along rows is always legal

        alias = {0: 0} if donate else {}
        out2d = pl.pallas_call(
            _drop_path_kernel,
            out_shape=jax.ShapeDtypeStruct((rows, L), x.dtype),
            grid=(pl.cdiv(rows, tile_r),),
            in_specs=[
                pl.BlockSpec((tile_r, L), lambda i: (i, 0)),
                pl.BlockSpec((tile_r, 1), lambda i: (i, 0)),
            ],
            out_specs=pl.BlockSpec((tile_r, L), lambda i: (i, 0)),
            compiler_params=cparams,
            input_output_aliases=alias,
        )(x2d, s2d)
        return out2d.reshape(x.shape)

    # Fallback: feature count not a multiple of 128.  Keep (B, F) layout with B
    # full-extent (legal per the (8,128) rule) and tile the lane axis.  Size the
    # tile from the sublane-PADDED row count: a (B=2, tile_f) f32 block occupies
    # 8 sublanes of VMEM, so sizing from B alone would overshoot the budget 4x.
    x2d = x.reshape(B, F)
    s2d = scale[:, None]  # (B, 1) f32

    padded_rows = pl.cdiv(B, sublane) * sublane
    tile_f = (block_bytes // (padded_rows * itemsize)) // 128 * 128
    tile_f = max(128, tile_f)
    if tile_f >= F or F < 128:
        tile_f = F  # single full-extent block

    out2d = pl.pallas_call(
        _drop_path_kernel,
        out_shape=jax.ShapeDtypeStruct((B, F), x.dtype),
        grid=(pl.cdiv(F, tile_f),),
        in_specs=[
            pl.BlockSpec((B, tile_f), lambda j: (0, j)),
            pl.BlockSpec((B, 1), lambda j: (0, 0)),
        ],
        out_specs=pl.BlockSpec((B, tile_f), lambda j: (0, j)),
        compiler_params=cparams,
    )(x2d, s2d)
    return out2d.reshape(x.shape)


def drop_path(x, drop_prob: float = 0.0, training: bool = False, *, key=None,
              donate: bool = False):
    """Pallas DropPath. x: [B, C, H, W] (or any [B, ...])."""
    if drop_prob == 0.0 or not training:
        return x
    if key is None:
        raise ValueError("need a PRNG key when training with drop_prob > 0")
    return _drop_path_impl(x, key, keep_prob=1.0 - float(drop_prob), donate=donate)


class DropPath:
    """Mirror of the PyTorch module: holds drop_prob and a training flag."""

    def __init__(self, drop_prob=None):
        self.drop_prob = drop_prob
        self.training = True

    def __call__(self, x, *, key=None, donate: bool = False):
        p = 0.0 if self.drop_prob is None else float(self.drop_prob)
        return drop_path(x, p, self.training, key=key, donate=donate)


if __name__ == "__main__":
    root = jax.random.PRNGKey(0)
    k_x, k_mask, k_x2, k_x3 = jax.random.split(root, 4)

    # --- main test: f32, NCHW [2, 4, 16, 16] (lane-dense slab path) ---
    B, C, H, W = 2, 4, 16, 16
    x = jax.random.normal(k_x, (B, C, H, W), dtype=jnp.float32)

    module = DropPath(drop_prob=0.25)
    y = jax.block_until_ready(module(x, key=k_mask))

    # Reference (uses jax RNG; distributionally — not bitwise — equal to torch).
    keep_prob = 1.0 - 0.25
    u = jax.random.uniform(k_mask, (B,), dtype=jnp.float32)
    mask = jnp.floor(keep_prob + u).reshape(B, 1, 1, 1)
    y_ref = x / keep_prob * mask
    assert jnp.allclose(y, y_ref, atol=1e-6, rtol=1e-6), "f32 mismatch vs reference"

    # --- bf16 test (mask/scale math stays in f32) ---
    x_bf16 = jax.random.normal(k_x2, (2, 8, 16, 16), dtype=jnp.bfloat16)
    y_bf16 = jax.block_until_ready(module(x_bf16, key=k_mask))
    mask2 = jnp.floor(keep_prob + u).reshape(2, 1, 1, 1)
    y_bf16_ref = (x_bf16.astype(jnp.float32) * (mask2 / keep_prob)).astype(jnp.bfloat16)
    assert jnp.allclose(
        y_bf16.astype(jnp.float32), y_bf16_ref.astype(jnp.float32), atol=1e-2, rtol=1e-2
    ), "bf16 mismatch vs reference"

    # --- odd feature count (fallback (B, F) path) ---
    x_odd = jax.random.normal(k_x3, (2, 3, 5, 7), dtype=jnp.float32)
    y_odd = jax.block_until_ready(module(x_odd, key=k_mask))
    y_odd_ref = x_odd / keep_prob * mask2
    assert jnp.allclose(y_odd, y_odd_ref, atol=1e-6, rtol=1e-6), "fallback mismatch"

    # --- eval path: identity ---
    module.training = False
    y_eval = jax.block_until_ready(module(x))
    assert jnp.array_equal(y_eval, x), "eval path must be identity"

    print("KERNEL_OK")
</pallas_src>

<mosaic_0001>
module attributes {stable_mosaic.version = 11 : i64} {
  func.func @_drop_path_kernel(%arg0: i32, %arg1: memref<8x256xf32, #tpu.memory_space<vmem>>, %arg2: memref<8x1xf32, #tpu.memory_space<vmem>>, %arg3: memref<8x256xf32, #tpu.memory_space<vmem>>) attributes {dimension_semantics = [#tpu.dimension_semantics<parallel>], iteration_bounds = array<i64: 1>, scalar_prefetch = 0 : i64, scratch_operands = 0 : i64, tpu.core_type = #tpu.core_type<tc>, window_params = [{transform_indices = @transform_0, window_bounds = array<i64: 8, 256>}, {transform_indices = @transform_1, window_bounds = array<i64: 8, 1>}, {transform_indices = @transform_2, window_bounds = array<i64: 8, 256>}]} {
    %c0 = arith.constant 0 : index
    %c0_0 = arith.constant 0 : index
    %0 = vector.load %arg1[%c0, %c0_0] : memref<8x256xf32, #tpu.memory_space<vmem>>, vector<8x256xf32>
    %c0_1 = arith.constant 0 : index
    %c0_2 = arith.constant 0 : index
    %1 = vector.load %arg2[%c0_1, %c0_2] : memref<8x1xf32, #tpu.memory_space<vmem>>, vector<8x1xf32>
    %2 = vector.broadcast %1 : vector<8x1xf32> to vector<8x256xf32>
    %3 = arith.mulf %0, %2 : vector<8x256xf32>
    %c0_3 = arith.constant 0 : index
    %c0_4 = arith.constant 0 : index
    %4 = vector.load %arg3[%c0_3, %c0_4] : memref<8x256xf32, #tpu.memory_space<vmem>>, vector<8x256xf32>
    tpu.vector_store %arg3[%c0_3, %c0_4], %3 {strides = array<i32>} : memref<8x256xf32, #tpu.memory_space<vmem>>, vector<8x256xf32>,
    return
  }
  func.func @transform_0(%arg0: i32) -> (i32, i32) {
    %c0_i32 = arith.constant 0 : i32
    %c0_i32_0 = arith.constant 0 : i32
    return %arg0, %c0_i32 : i32, i32
  }
  func.func @transform_1(%arg0: i32) -> (i32, i32) {
    %c0_i32 = arith.constant 0 : i32
    %c0_i32_0 = arith.constant 0 : i32
    return %arg0, %c0_i32 : i32, i32
  }
  func.func @transform_2(%arg0: i32) -> (i32, i32) {
    %c0_i32 = arith.constant 0 : i32
    %c0_i32_0 = arith.constant 0 : i32
    return %arg0, %c0_i32 : i32, i32
  }
}

</mosaic_0001>

<bundles_post_ra>
// kernel: _drop_path_impl.1
= control target key start
LH: loop header
LB: loop body
LE: loop exit
PB: predicated region body
PF: predicated region fallthrough
CT: control target
= control target key end

     0   :  { %v29_v0 = vmov 0   ;;  %s60_s1 = inlined_call_operand.vmem [shape: f32[8,1], index: 1, kind: input, shape index: {}]   ;;  %s61_s0 = inlined_call_operand.vmem [shape: f32[8,256], index: 0, kind: input, shape index: {}]   ;;  %s62_s2 = inlined_call_operand.vmem [shape: f32[8,256], index: 2, kind: output, shape index: {}]  }
   0x1   :  { %28 = vset.pattern.permute.xlu0 %v29_v0  ;;  %v13_v1 = vld [vmem:[%s60_s1] sm:$0xff]  ;;  %v12_v3 = vld [vmem:[%s61_s0 + $0x8] sm:$0xff] }
   0x2   :  { %16 = vperm.xlu0 %28, %v13_v1   ;;  %v11_v2 = vld [vmem:[%s61_s0] sm:$0xff] }
  0x74   :  { %v17_v4 = vpop.permute.xlu0 %16 }
  0x75   :  { %v19_v5 = vmul.f32 %v17_v4, %v11_v2  ;;  %v20_v6 = vmul.f32 %v17_v4, %v12_v3 }
  0x77   :  { %21 = vst [vmem:[%s62_s2] sm:$0xff] %v19_v5 }
  0x78   :  { %22 = vst [vmem:[%s62_s2 + $0x8] sm:$0xff] %v20_v6 }

</bundles_post_ra>
